<compile_context>
chip_gen: v5e
topology: v5e:2x2
jax: 0.10.0
libtpu: 0.0.40
codegen_flags: <defaults>
</compile_context>

<pallas_src>
import jax
import jax.numpy as jnp
from jax.experimental import pallas as pl
from jax.experimental.pallas import tpu as pltpu

_LANE = 128
_MIN_STEPS = 8                 # give v7x's two TensorCores work to split
_MIN_TILE_BYTES = 512 * 1024   # don't shrink tiles below this for parallelism


def _normalize_kernel(x_ref, p_ref, o_ref):
    # x tile: (br, bc); p tile: (br, 2) f32 with [:, 0]=mean, [:, 1]=1/std.
    # Compute in f32 (VPU has slack in this HBM-bound stream), cast at store.
    x = x_ref[...].astype(jnp.float32)
    mean = p_ref[:, 0:1]
    inv_std = p_ref[:, 1:2]
    o_ref[...] = ((x - mean) * inv_std).astype(o_ref.dtype)


def _vmem_plan():
    """Per-generation (per-step tile-set budget, scoped vmem limit) in bytes."""
    phys = 64 * 1024 * 1024                 # conservative default (= v7x per-TC VMEM)
    try:
        info = pltpu.get_tpu_info()
        phys = int(getattr(info, "vmem_capacity_bytes", phys))
    except Exception:
        pass
    if phys >= 96 * 1024 * 1024:            # v5e / v6e: 128 MiB physical VMEM
        return 8 * 1024 * 1024, 64 * 1024 * 1024
    # v7x (64 MiB physical): keep the double-buffered footprint well under the
    # 32 MiB scoped default.
    return 6 * 1024 * 1024, 32 * 1024 * 1024


def _choose_tiles(rows, cols, itemsize, budget):
    """Pick (br, bc) so 2 buffers of (x + out + padded params) fit ~2*budget."""
    sub = 8 * max(1, 4 // itemsize)         # sublane pack for the x dtype
    params_row_bytes = _LANE * 4            # (br, 2) f32 tile lane-pads to 128 wide

    # Column block: full H*W extent when a sublane-tall full-width slab fits,
    # otherwise a multiple-of-128 slice sized to the budget (bounds the
    # footprint for arbitrarily large spatial sizes).
    if sub * (2 * cols * itemsize + params_row_bytes) <= budget:
        bc = cols
    else:
        bc = (budget // sub - params_row_bytes) // (2 * itemsize)
        bc = max(_LANE, bc // _LANE * _LANE)
        bc = min(bc, cols)

    per_row_bytes = 2 * bc * itemsize + params_row_bytes   # x + out + params, 1 buffer
    br = max(sub, (budget // per_row_bytes) // sub * sub)
    if br >= rows:
        br = rows                                          # full extent is always legal

    # Ensure enough grid steps for cross-TensorCore sharding on v7x, without
    # shrinking tiles into per-step-overhead territory.
    def _nsteps(br_, bc_):
        return (-(-rows // br_)) * (-(-cols // bc_))

    while _nsteps(br, bc) < _MIN_STEPS:
        if br >= 2 * sub and (br // 2) * bc * itemsize >= _MIN_TILE_BYTES:
            br = (br // 2) // sub * sub
        elif bc >= 2 * _LANE and br * (bc // 2) * itemsize >= _MIN_TILE_BYTES:
            bc = (bc // 2) // _LANE * _LANE
        else:
            break
    return br, bc


def data_normalizer(x: jax.Array, mean: jax.Array, std: jax.Array) -> jax.Array:
    """(x - mean) / std with std==0 replaced by 1.

    x:    (N, C, H, W)   -- NCHW, same as the PyTorch module
    mean: per-channel values, any shape that flattens to (C,) (e.g. (C, 1, 1))
    std:  per-channel values, any shape that flattens to (C,)
    """
    N, C, H, W = x.shape
    rows, cols = N * C, H * W
    dt = x.dtype
    itemsize = jnp.dtype(dt).itemsize

    # std==0 -> 1 fixup and reciprocal hoisted out of the per-element path
    # (touches only C scalars). Params stay f32; kernel casts at the store.
    std_c = jnp.asarray(std).reshape(C).astype(jnp.float32)
    inv_std_c = 1.0 / jnp.where(std_c == 0.0, 1.0, std_c)
    mean_c = jnp.asarray(mean).reshape(C).astype(jnp.float32)

    # One packed per-row parameter array: (rows, 2) = [mean, 1/std].
    params_c = jnp.stack([mean_c, inv_std_c], axis=-1)               # (C, 2) f32
    params_rows = jnp.broadcast_to(params_c[None], (N, C, 2)).reshape(rows, 2)

    x2d = x.reshape(rows, cols)

    budget, vmem_limit = _vmem_plan()
    br, bc = _choose_tiles(rows, cols, itemsize, budget)
    grid = (pl.cdiv(rows, br), pl.cdiv(cols, bc))

    out2d = pl.pallas_call(
        _normalize_kernel,
        out_shape=jax.ShapeDtypeStruct((rows, cols), dt),
        grid=grid,
        in_specs=[
            pl.BlockSpec((br, bc), lambda i, j: (i, j)),
            pl.BlockSpec((br, 2), lambda i, j: (i, 0)),
        ],
        out_specs=pl.BlockSpec((br, bc), lambda i, j: (i, j)),
        compiler_params=pltpu.CompilerParams(
            dimension_semantics=("parallel", "parallel"),
            vmem_limit_bytes=vmem_limit,
        ),
        cost_estimate=pl.CostEstimate(
            flops=2 * rows * cols,
            bytes_accessed=2 * rows * cols * itemsize + rows * 2 * 4,
            transcendentals=0,
        ),
    )(x2d, params_rows)

    return out2d.reshape(N, C, H, W)


if __name__ == "__main__":
    key = jax.random.PRNGKey(0)
    kx, km, ks = jax.random.split(key, 3)

    N, C, H, W = 2, 4, 16, 16
    x = jax.random.normal(kx, (N, C, H, W), dtype=jnp.float32)

    # Per-channel buffers, shape (C, 1, 1) as in typical DataNormalizer usage.
    mean = jax.random.normal(km, (C, 1, 1), dtype=jnp.float32)
    std = jnp.abs(jax.random.normal(ks, (C, 1, 1), dtype=jnp.float32))
    std = std.at[1, 0, 0].set(0.0)   # exercise the std==0 -> 1 path

    out = data_normalizer(x, mean, std)
    out = jax.block_until_ready(out)

    # Pure-JAX reference (divide form, as in PyTorch).
    safe_std = jnp.where(std == 0, 1.0, std)
    ref = (x - mean) / safe_std
    assert out.shape == x.shape and out.dtype == x.dtype
    # Reciprocal-multiply vs divide differs by ~1 ulp; keep a small rtol.
    assert jnp.allclose(out, ref, atol=1e-6, rtol=1e-5)

    print("KERNEL_OK")
</pallas_src>

<mosaic_0001>
module attributes {stable_mosaic.version = 11 : i64} {
  func.func @_normalize_kernel(%arg0: i32, %arg1: i32, %arg2: memref<8x256xf32, #tpu.memory_space<vmem>>, %arg3: memref<8x2xf32, #tpu.memory_space<vmem>>, %arg4: memref<8x256xf32, #tpu.memory_space<vmem>>) attributes {dimension_semantics = [#tpu.dimension_semantics<parallel>, #tpu.dimension_semantics<parallel>], iteration_bounds = array<i64: 1, 1>, scalar_prefetch = 0 : i64, scratch_operands = 0 : i64, tpu.core_type = #tpu.core_type<tc>, window_params = [{transform_indices = @transform_0, window_bounds = array<i64: 8, 256>}, {transform_indices = @transform_1, window_bounds = array<i64: 8, 2>}, {transform_indices = @transform_2, window_bounds = array<i64: 8, 256>}]} {
    %c0 = arith.constant 0 : index
    %c0_0 = arith.constant 0 : index
    %0 = vector.load %arg2[%c0, %c0_0] : memref<8x256xf32, #tpu.memory_space<vmem>>, vector<8x256xf32>
    %c0_1 = arith.constant 0 : index
    %c0_2 = arith.constant 0 : index
    %1 = vector.load %arg3[%c0_1, %c0_2] : memref<8x2xf32, #tpu.memory_space<vmem>>, vector<8x1xf32>
    %c0_3 = arith.constant 0 : index
    %c1 = arith.constant 1 : index
    %2 = vector.load %arg3[%c0_3, %c1] : memref<8x2xf32, #tpu.memory_space<vmem>>, vector<8x1xf32>
    %3 = vector.broadcast %1 : vector<8x1xf32> to vector<8x256xf32>
    %4 = arith.subf %0, %3 : vector<8x256xf32>
    %5 = vector.broadcast %2 : vector<8x1xf32> to vector<8x256xf32>
    %6 = arith.mulf %4, %5 : vector<8x256xf32>
    %c0_4 = arith.constant 0 : index
    %c0_5 = arith.constant 0 : index
    %7 = vector.load %arg4[%c0_4, %c0_5] : memref<8x256xf32, #tpu.memory_space<vmem>>, vector<8x256xf32>
    tpu.vector_store %arg4[%c0_4, %c0_5], %6 {strides = array<i32>} : memref<8x256xf32, #tpu.memory_space<vmem>>, vector<8x256xf32>,
    return
  }
  func.func @transform_0(%arg0: i32, %arg1: i32) -> (i32, i32) {
    %c0_i32 = arith.constant 0 : i32
    return %arg0, %arg1 : i32, i32
  }
  func.func @transform_1(%arg0: i32, %arg1: i32) -> (i32, i32) {
    %c0_i32 = arith.constant 0 : i32
    %c0_i32_0 = arith.constant 0 : i32
    return %arg0, %c0_i32 : i32, i32
  }
  func.func @transform_2(%arg0: i32, %arg1: i32) -> (i32, i32) {
    %c0_i32 = arith.constant 0 : i32
    return %arg0, %arg1 : i32, i32
  }
}

</mosaic_0001>

<bundles_post_ra>
// kernel: tpu_custom_call.1
= control target key start
LH: loop header
LB: loop body
LE: loop exit
PB: predicated region body
PF: predicated region fallthrough
CT: control target
= control target key end

     0   :  { %7 = vsyncpa [#allocation3], 0  ;;  %s147_s0 = inlined_call_operand.hbm [shape: f32[8,256], index: 0, kind: input, shape index: {}]   ;;  %s148_s1 = inlined_call_operand.vmem [shape: f32[8,2], index: 1, kind: input, shape index: {}]   ;;  %s149_s2 = inlined_call_operand.hbm [shape: f32[8,256], index: 2, kind: output, shape index: {}]  }
   0x1   :  { %8 = vsyncpa [#allocation4], 0  ;;  %s14_s11 = sshll.u32 %s147_s0, 4  ;;  %s119_s12 = smov [#allocation2]   ;;  %s15_s11 = int_to_ptr.hbm [resolvable:$true] %s14_s11 }
   0x2   :  { %s16_s13 = sshll.u32 %s119_s12, 4  ;;  %s17_s13 = int_to_ptr.vmem [resolvable:$true] %s16_s13 }
   0x3   :  { %19 = dma.hbm_to_vmem [thread:$0]  %s15_s11, 256, %s17_s13, [#allocation3]  }
   0x4   :  { %115 = dma.done.wait [#allocation3], 256  }
   0x5   :  { %116 = vsyncadd [#allocation3], 4294967040  ;;  %v120_v0 = vmov 0   ;;  %v28_v1 = vld [vmem:[%s148_s1] sm:$0xff]  ;;  %v121_v2 = vmov 1   ;;  %v27_v5 = vld [vmem:[#allocation2 + $0x8] sm:$0xff] }
   0x6   :  { %65 = vset.pattern.permute.xlu0 %v120_v0  ;;  %v26_v4 = vld [vmem:[#allocation2] sm:$0xff]  ;;  %s122_s0 = smov [#allocation5]   ;;  %s51_s19 = sshll.u32 %s149_s2, 4  ;;  %s52_s19 = int_to_ptr.hbm [resolvable:$true] %s51_s19 }
   0x7   :  { %31 = vperm.xlu0 %65, %v28_v1   ;;  %s49_s16 = sshll.u32 %s122_s0, 4  ;;  %s50_s16 = int_to_ptr.vmem [resolvable:$true] %s49_s16 }
   0xf   :  { %66 = vset.pattern.permute.xlu0 %v121_v2 }
  0x10   :  { %37 = vperm.xlu0 %66, %v28_v1  }
  0x79   :  { %v32_v3 = vpop.permute.xlu0 %31 }
  0x7a   :  { %v34_v6 = vsub.f32 %v26_v4, %v32_v3  ;;  %v35_v7 = vsub.f32 %v27_v5, %v32_v3 }
  0x82   :  { %v38_v8 = vpop.permute.xlu0 %37 }
  0x83   :  { %v40_v9 = vmul.f32 %v38_v8, %v34_v6  ;;  %v41_v10 = vmul.f32 %v38_v8, %v35_v7 }
  0x85   :  { %42 = vst [vmem:[#allocation5] sm:$0xff] %v40_v9 }
  0x86   :  { %43 = vst [vmem:[#allocation5 + $0x8] sm:$0xff] %v41_v10 }
  0x87   :  { %54 = dma.vmem_to_hbm [thread:$0]  %s50_s16, 256, %s52_s19, [#allocation4]  }
  0x88   :  { %117 = dma.done.wait [#allocation4], 256  }
  0x89   :  { %118 = vsyncadd [#allocation4], 4294967040 }
  0x8a   :  { %59 = vsyncpa [#allocation3], 1 }
  0x8b   :  { %60 = vsyncpa [#allocation4], 1 }

</bundles_post_ra>
